<compile_context>
chip_gen: v7x
topology: tpu7x:2x2x1
jax: 0.10.0
libtpu: 0.0.40
codegen_flags: <defaults>
</compile_context>

<pallas_src>
import jax
import jax.numpy as jnp
import numpy as np
from jax.experimental import pallas as pl
from jax.experimental.pallas import tpu as pltpu

_LANES = 128
_SUBLANES = 8


def _pick_row_tile(S, C, B):
    """Pick rows-of-128-pixels per grid step and a matching VMEM limit.

    Per-step working set = input block (C x s_tile x 128 f32) + 4 output blocks
    (s_tile x 128 f32 each), double-buffered by the Pallas pipeline.
    """
    try:
        vmem_cap = int(pltpu.get_tpu_info().vmem_capacity_bytes)
    except Exception:  # interpret mode / older runtimes
        vmem_cap = 64 * 1024 * 1024            # v7x per-TC capacity (most conservative)
    budget = vmem_cap // 4                      # headroom for Mosaic internal scratch
    vmem_limit = vmem_cap // 2                  # explicit scoped-VMEM limit to pass along

    if S <= _SUBLANES:
        return S, vmem_limit                    # tiny image: one (possibly partial) block

    per_row_bytes = (C + 4) * _LANES * 4        # f32 input slabs + 4 f32 outputs per pixel-row
    cap = (budget // (2 * per_row_bytes)) // _SUBLANES * _SUBLANES
    cap = max(_SUBLANES, min(cap, 1024))

    # Largest multiple-of-8 tile <= cap that divides S exactly (no ragged tail).
    s_tile = None
    t = min(cap, (S // _SUBLANES) * _SUBLANES)
    while t >= _SUBLANES:
        if S % t == 0:
            s_tile = t
            break
        t -= _SUBLANES
    if s_tile is None:
        # No clean divisor: take the largest 8-multiple <= min(cap, S); the
        # ragged last block is handled by the ceiling-divide grid (masked writes).
        s_tile = min(cap, max(_SUBLANES, (S // _SUBLANES) * _SUBLANES))

    # Megacore balance (v7x has 2 TensorCores): keep at least ~4 grid steps.
    while s_tile > _SUBLANES and B * (-(-S // s_tile)) < 4:
        s_tile = max(_SUBLANES, (s_tile // 2) // _SUBLANES * _SUBLANES)

    return s_tile, vmem_limit


def _make_ensemble_kernel(E, C):
    inv_n = 1.0 / E

    def kernel(w_ref, b_ref, x_ref, am_ref, av_ref, pm_ref, pv_ref):
        # w_ref: SMEM (E*C*4,) f32  (logsigma columns pre-scaled by 2)
        # b_ref: SMEM (E*4,)   f32  (logsigma columns pre-scaled by 2)
        # x_ref: VMEM (1, C, s_tile, 128)
        # out refs: VMEM (1, 1, s_tile, 128) each
        xs = [x_ref[0, c] for c in range(C)]   # C slabs, each (s_tile, 128)

        def model_heads(e):
            wb = e * C * 4
            bb = e * 4
            heads = []
            for j in range(4):
                # per-pixel linear head: VPU broadcast-FMA chain, SMEM scalar weights
                y = xs[0] * w_ref[wb + j] + b_ref[bb + j]
                for c in range(1, C):
                    y = y + xs[c] * w_ref[wb + c * 4 + j]
                heads.append(y)
            return heads  # (amps_mean, 2*amps_logsigma, phi_mean, 2*phi_logsigma)

        # Fuse the ensemble reduction in-register (E is small, fully unrolled);
        # each model's heads fold into the accumulators immediately.
        am0, als0, pm0, pls0 = model_heads(0)
        sum_am = am0
        sum_am2 = jnp.exp(als0) + am0 * am0     # exp(2*logsigma) == sigma^2
        sum_pm = pm0
        sum_pm2 = jnp.exp(pls0) + pm0 * pm0
        for e in range(1, E):
            am_e, als_e, pm_e, pls_e = model_heads(e)
            sum_am = sum_am + am_e
            sum_am2 = sum_am2 + jnp.exp(als_e) + am_e * am_e
            sum_pm = sum_pm + pm_e
            sum_pm2 = sum_pm2 + jnp.exp(pls_e) + pm_e * pm_e

        amps_mean = sum_am * inv_n
        phi_mean = sum_pm * inv_n
        # E[var + mu^2] - (E[mu])^2  (matches the PyTorch reference; tiny negative
        # values from f32 cancellation are possible, exactly as in torch).
        amps_var = sum_am2 * inv_n - amps_mean * amps_mean
        phi_var = sum_pm2 * inv_n - phi_mean * phi_mean

        am_ref[0, 0, :, :] = amps_mean
        av_ref[0, 0, :, :] = amps_var
        pm_ref[0, 0, :, :] = phi_mean
        pv_ref[0, 0, :, :] = phi_var

    return kernel


def deep_ensemble_forward(x_nchw, weights, biases):
    """x_nchw: [B, C, H, W] f32; weights: [E, C, 4]; biases: [E, 4].

    Returns (amps_mean, amps_var, phi_mean, phi_var), each [B, 1, H, W] f32.
    """
    B, C, H, W = x_nchw.shape
    E = weights.shape[0]
    HW = H * W

    # Lay pixels out as rows of 128 lanes. Pad only when HW is not already
    # lane-aligned (typical ptychography sizes are powers of two -> no pad).
    # TODO(synk): handle a ragged 128-lane tail in-kernel (masked last group)
    # to avoid this HBM pad/slice round-trip for odd image sizes.
    HWp = -(-HW // _LANES) * _LANES
    x3 = x_nchw.reshape(B, C, HW)
    if HWp != HW:
        x3 = jnp.pad(x3, ((0, 0), (0, 0), (0, HWp - HW)))
    S = HWp // _LANES
    x4 = x3.reshape(B, C, S, _LANES)            # channels on a major axis

    s_tile, vmem_limit = _pick_row_tile(S, C, B)
    n_tiles = -(-S // s_tile)                   # ragged last block handled by Pallas
    grid = (B, n_tiles)

    # Fold the 2x of exp(2*logsigma) into the logsigma weight/bias columns.
    col_scale = jnp.array([1.0, 2.0, 1.0, 2.0], jnp.float32)
    w_flat = (weights.astype(jnp.float32) * col_scale).reshape(-1)   # (E*C*4,)
    b_flat = (biases.astype(jnp.float32) * col_scale).reshape(-1)    # (E*4,)

    kernel = _make_ensemble_kernel(E, C)

    out_shapes = tuple(
        jax.ShapeDtypeStruct((B, 1, S, _LANES), jnp.float32) for _ in range(4)
    )
    out_spec = pl.BlockSpec((1, 1, s_tile, _LANES), lambda b, t: (b, 0, t, 0))

    am, av, pm, pv = pl.pallas_call(
        kernel,
        out_shape=out_shapes,
        grid=grid,
        in_specs=[
            pl.BlockSpec(memory_space=pltpu.MemorySpace.SMEM),   # weights (scalars)
            pl.BlockSpec(memory_space=pltpu.MemorySpace.SMEM),   # biases  (scalars)
            pl.BlockSpec((1, C, s_tile, _LANES), lambda b, t: (b, 0, t, 0)),  # x tile
        ],
        out_specs=(out_spec, out_spec, out_spec, out_spec),
        compiler_params=pltpu.CompilerParams(
            dimension_semantics=("parallel", "parallel"),
            vmem_limit_bytes=int(vmem_limit),
        ),
    )(w_flat, b_flat, x4)

    def back(a):
        a = a.reshape(B, 1, HWp)
        if HWp != HW:
            a = a[:, :, :HW]
        return a.reshape(B, 1, H, W)

    return back(am), back(av), back(pm), back(pv)


def _reference_forward(x_nchw, weights, biases):
    """Pure-JAX reference mirroring the PyTorch DeepEnsemble math."""
    B, C, H, W = x_nchw.shape
    x_flat = jnp.transpose(x_nchw, (0, 2, 3, 1)).reshape(-1, C)              # [M, C]
    y = jnp.einsum("mc,ecd->emd", x_flat, weights) + biases[:, None, :]      # [E, M, 4]
    am, als, pm, pls = y[..., 0], y[..., 1], y[..., 2], y[..., 3]
    av = jnp.square(jnp.exp(als))
    pv = jnp.square(jnp.exp(pls))
    amps_mean = jnp.mean(am, axis=0)
    phi_mean = jnp.mean(pm, axis=0)
    amps_var = jnp.mean(av + jnp.square(am), axis=0) - jnp.square(amps_mean)
    phi_var = jnp.mean(pv + jnp.square(pm), axis=0) - jnp.square(phi_mean)

    def back(col):
        return col.reshape(B, H, W)[:, None, :, :]

    return back(amps_mean), back(amps_var), back(phi_mean), back(phi_var)


if __name__ == "__main__":
    B, C, H, W = 2, 4, 16, 16
    E = 3  # number of models in the ensemble

    key = jax.random.PRNGKey(0)
    kx, kw, kb = jax.random.split(key, 3)
    x = jax.random.normal(kx, (B, C, H, W), dtype=jnp.float32)
    # TODO(synk): real PtychoPNN submodels are full CNNs; they are synthesized
    # here as per-pixel linear heads with these weights/biases.
    weights = 0.1 * jax.random.normal(kw, (E, C, 4), dtype=jnp.float32)
    biases = 0.05 * jax.random.normal(kb, (E, 4), dtype=jnp.float32)

    outs = deep_ensemble_forward(x, weights, biases)
    outs = jax.block_until_ready(outs)

    refs = _reference_forward(x, weights, biases)
    for o, r in zip(outs, refs):
        np.testing.assert_allclose(np.asarray(o), np.asarray(r), rtol=1e-5, atol=1e-5)

    print("KERNEL_OK")
</pallas_src>

<mosaic_0001>
module attributes {stable_mosaic.version = 11 : i64} {
  func.func @kernel(%arg0: i32, %arg1: i32, %arg2: memref<48xf32, #tpu.memory_space<smem>>, %arg3: memref<12xf32, #tpu.memory_space<smem>>, %arg4: memref<1x4x2x128xf32, #tpu.memory_space<vmem>>, %arg5: memref<1x1x2x128xf32, #tpu.memory_space<vmem>>, %arg6: memref<1x1x2x128xf32, #tpu.memory_space<vmem>>, %arg7: memref<1x1x2x128xf32, #tpu.memory_space<vmem>>, %arg8: memref<1x1x2x128xf32, #tpu.memory_space<vmem>>) attributes {dimension_semantics = [#tpu.dimension_semantics<parallel>, #tpu.dimension_semantics<parallel>], iteration_bounds = array<i64: 2, 1>, scalar_prefetch = 0 : i64, scratch_operands = 0 : i64, tpu.core_type = #tpu.core_type<tc>, window_params = [{transform_indices = @transform_0, window_bounds = array<i64: 48>}, {transform_indices = @transform_1, window_bounds = array<i64: 12>}, {transform_indices = @transform_2, window_bounds = array<i64: 1, 4, 2, 128>}, {transform_indices = @transform_3, window_bounds = array<i64: 1, 1, 2, 128>}, {transform_indices = @transform_4, window_bounds = array<i64: 1, 1, 2, 128>}, {transform_indices = @transform_5, window_bounds = array<i64: 1, 1, 2, 128>}, {transform_indices = @transform_6, window_bounds = array<i64: 1, 1, 2, 128>}]} {
    %c0 = arith.constant 0 : index
    %c0_0 = arith.constant 0 : index
    %c0_1 = arith.constant 0 : index
    %c0_2 = arith.constant 0 : index
    %0 = vector.load %arg4[%c0, %c0_0, %c0_1, %c0_2] : memref<1x4x2x128xf32, #tpu.memory_space<vmem>>, vector<1x1x2x128xf32>
    %1 = vector.shape_cast %0 : vector<1x1x2x128xf32> to vector<2x128xf32>
    %c0_3 = arith.constant 0 : index
    %c1 = arith.constant 1 : index
    %c0_4 = arith.constant 0 : index
    %c0_5 = arith.constant 0 : index
    %2 = vector.load %arg4[%c0_3, %c1, %c0_4, %c0_5] : memref<1x4x2x128xf32, #tpu.memory_space<vmem>>, vector<1x1x2x128xf32>
    %3 = vector.shape_cast %2 : vector<1x1x2x128xf32> to vector<2x128xf32>
    %c0_6 = arith.constant 0 : index
    %c2 = arith.constant 2 : index
    %c0_7 = arith.constant 0 : index
    %c0_8 = arith.constant 0 : index
    %4 = vector.load %arg4[%c0_6, %c2, %c0_7, %c0_8] : memref<1x4x2x128xf32, #tpu.memory_space<vmem>>, vector<1x1x2x128xf32>
    %5 = vector.shape_cast %4 : vector<1x1x2x128xf32> to vector<2x128xf32>
    %c0_9 = arith.constant 0 : index
    %c3 = arith.constant 3 : index
    %c0_10 = arith.constant 0 : index
    %c0_11 = arith.constant 0 : index
    %6 = vector.load %arg4[%c0_9, %c3, %c0_10, %c0_11] : memref<1x4x2x128xf32, #tpu.memory_space<vmem>>, vector<1x1x2x128xf32>
    %7 = vector.shape_cast %6 : vector<1x1x2x128xf32> to vector<2x128xf32>
    %c0_12 = arith.constant 0 : index
    %8 = memref.load %arg2[%c0_12] : memref<48xf32, #tpu.memory_space<smem>>
    %9 = vector.broadcast %8 : f32 to vector<2x128xf32>
    %10 = arith.mulf %1, %9 : vector<2x128xf32>
    %c0_13 = arith.constant 0 : index
    %11 = memref.load %arg3[%c0_13] : memref<12xf32, #tpu.memory_space<smem>>
    %12 = vector.broadcast %11 : f32 to vector<2x128xf32>
    %13 = arith.addf %10, %12 : vector<2x128xf32>
    %c4 = arith.constant 4 : index
    %14 = memref.load %arg2[%c4] : memref<48xf32, #tpu.memory_space<smem>>
    %15 = vector.broadcast %14 : f32 to vector<2x128xf32>
    %16 = arith.mulf %3, %15 : vector<2x128xf32>
    %17 = arith.addf %13, %16 : vector<2x128xf32>
    %c8 = arith.constant 8 : index
    %18 = memref.load %arg2[%c8] : memref<48xf32, #tpu.memory_space<smem>>
    %19 = vector.broadcast %18 : f32 to vector<2x128xf32>
    %20 = arith.mulf %5, %19 : vector<2x128xf32>
    %21 = arith.addf %17, %20 : vector<2x128xf32>
    %c12 = arith.constant 12 : index
    %22 = memref.load %arg2[%c12] : memref<48xf32, #tpu.memory_space<smem>>
    %23 = vector.broadcast %22 : f32 to vector<2x128xf32>
    %24 = arith.mulf %7, %23 : vector<2x128xf32>
    %25 = arith.addf %21, %24 : vector<2x128xf32>
    %c1_14 = arith.constant 1 : index
    %26 = memref.load %arg2[%c1_14] : memref<48xf32, #tpu.memory_space<smem>>
    %27 = vector.broadcast %26 : f32 to vector<2x128xf32>
    %28 = arith.mulf %1, %27 : vector<2x128xf32>
    %c1_15 = arith.constant 1 : index
    %29 = memref.load %arg3[%c1_15] : memref<12xf32, #tpu.memory_space<smem>>
    %30 = vector.broadcast %29 : f32 to vector<2x128xf32>
    %31 = arith.addf %28, %30 : vector<2x128xf32>
    %c5 = arith.constant 5 : index
    %32 = memref.load %arg2[%c5] : memref<48xf32, #tpu.memory_space<smem>>
    %33 = vector.broadcast %32 : f32 to vector<2x128xf32>
    %34 = arith.mulf %3, %33 : vector<2x128xf32>
    %35 = arith.addf %31, %34 : vector<2x128xf32>
    %c9 = arith.constant 9 : index
    %36 = memref.load %arg2[%c9] : memref<48xf32, #tpu.memory_space<smem>>
    %37 = vector.broadcast %36 : f32 to vector<2x128xf32>
    %38 = arith.mulf %5, %37 : vector<2x128xf32>
    %39 = arith.addf %35, %38 : vector<2x128xf32>
    %c13 = arith.constant 13 : index
    %40 = memref.load %arg2[%c13] : memref<48xf32, #tpu.memory_space<smem>>
    %41 = vector.broadcast %40 : f32 to vector<2x128xf32>
    %42 = arith.mulf %7, %41 : vector<2x128xf32>
    %43 = arith.addf %39, %42 : vector<2x128xf32>
    %c2_16 = arith.constant 2 : index
    %44 = memref.load %arg2[%c2_16] : memref<48xf32, #tpu.memory_space<smem>>
    %45 = vector.broadcast %44 : f32 to vector<2x128xf32>
    %46 = arith.mulf %1, %45 : vector<2x128xf32>
    %c2_17 = arith.constant 2 : index
    %47 = memref.load %arg3[%c2_17] : memref<12xf32, #tpu.memory_space<smem>>
    %48 = vector.broadcast %47 : f32 to vector<2x128xf32>
    %49 = arith.addf %46, %48 : vector<2x128xf32>
    %c6 = arith.constant 6 : index
    %50 = memref.load %arg2[%c6] : memref<48xf32, #tpu.memory_space<smem>>
    %51 = vector.broadcast %50 : f32 to vector<2x128xf32>
    %52 = arith.mulf %3, %51 : vector<2x128xf32>
    %53 = arith.addf %49, %52 : vector<2x128xf32>
    %c10 = arith.constant 10 : index
    %54 = memref.load %arg2[%c10] : memref<48xf32, #tpu.memory_space<smem>>
    %55 = vector.broadcast %54 : f32 to vector<2x128xf32>
    %56 = arith.mulf %5, %55 : vector<2x128xf32>
    %57 = arith.addf %53, %56 : vector<2x128xf32>
    %c14 = arith.constant 14 : index
    %58 = memref.load %arg2[%c14] : memref<48xf32, #tpu.memory_space<smem>>
    %59 = vector.broadcast %58 : f32 to vector<2x128xf32>
    %60 = arith.mulf %7, %59 : vector<2x128xf32>
    %61 = arith.addf %57, %60 : vector<2x128xf32>
    %c3_18 = arith.constant 3 : index
    %62 = memref.load %arg2[%c3_18] : memref<48xf32, #tpu.memory_space<smem>>
    %63 = vector.broadcast %62 : f32 to vector<2x128xf32>
    %64 = arith.mulf %1, %63 : vector<2x128xf32>
    %c3_19 = arith.constant 3 : index
    %65 = memref.load %arg3[%c3_19] : memref<12xf32, #tpu.memory_space<smem>>
    %66 = vector.broadcast %65 : f32 to vector<2x128xf32>
    %67 = arith.addf %64, %66 : vector<2x128xf32>
    %c7 = arith.constant 7 : index
    %68 = memref.load %arg2[%c7] : memref<48xf32, #tpu.memory_space<smem>>
    %69 = vector.broadcast %68 : f32 to vector<2x128xf32>
    %70 = arith.mulf %3, %69 : vector<2x128xf32>
    %71 = arith.addf %67, %70 : vector<2x128xf32>
    %c11 = arith.constant 11 : index
    %72 = memref.load %arg2[%c11] : memref<48xf32, #tpu.memory_space<smem>>
    %73 = vector.broadcast %72 : f32 to vector<2x128xf32>
    %74 = arith.mulf %5, %73 : vector<2x128xf32>
    %75 = arith.addf %71, %74 : vector<2x128xf32>
    %c15 = arith.constant 15 : index
    %76 = memref.load %arg2[%c15] : memref<48xf32, #tpu.memory_space<smem>>
    %77 = vector.broadcast %76 : f32 to vector<2x128xf32>
    %78 = arith.mulf %7, %77 : vector<2x128xf32>
    %79 = arith.addf %75, %78 : vector<2x128xf32>
    %80 = math.exp %43 : vector<2x128xf32>
    %81 = arith.mulf %25, %25 : vector<2x128xf32>
    %82 = arith.addf %80, %81 : vector<2x128xf32>
    %83 = math.exp %79 : vector<2x128xf32>
    %84 = arith.mulf %61, %61 : vector<2x128xf32>
    %85 = arith.addf %83, %84 : vector<2x128xf32>
    %c16 = arith.constant 16 : index
    %86 = memref.load %arg2[%c16] : memref<48xf32, #tpu.memory_space<smem>>
    %87 = vector.broadcast %86 : f32 to vector<2x128xf32>
    %88 = arith.mulf %1, %87 : vector<2x128xf32>
    %c4_20 = arith.constant 4 : index
    %89 = memref.load %arg3[%c4_20] : memref<12xf32, #tpu.memory_space<smem>>
    %90 = vector.broadcast %89 : f32 to vector<2x128xf32>
    %91 = arith.addf %88, %90 : vector<2x128xf32>
    %c20 = arith.constant 20 : index
    %92 = memref.load %arg2[%c20] : memref<48xf32, #tpu.memory_space<smem>>
    %93 = vector.broadcast %92 : f32 to vector<2x128xf32>
    %94 = arith.mulf %3, %93 : vector<2x128xf32>
    %95 = arith.addf %91, %94 : vector<2x128xf32>
    %c24 = arith.constant 24 : index
    %96 = memref.load %arg2[%c24] : memref<48xf32, #tpu.memory_space<smem>>
    %97 = vector.broadcast %96 : f32 to vector<2x128xf32>
    %98 = arith.mulf %5, %97 : vector<2x128xf32>
    %99 = arith.addf %95, %98 : vector<2x128xf32>
    %c28 = arith.constant 28 : index
    %100 = memref.load %arg2[%c28] : memref<48xf32, #tpu.memory_space<smem>>
    %101 = vector.broadcast %100 : f32 to vector<2x128xf32>
    %102 = arith.mulf %7, %101 : vector<2x128xf32>
    %103 = arith.addf %99, %102 : vector<2x128xf32>
    %c17 = arith.constant 17 : index
    %104 = memref.load %arg2[%c17] : memref<48xf32, #tpu.memory_space<smem>>
    %105 = vector.broadcast %104 : f32 to vector<2x128xf32>
    %106 = arith.mulf %1, %105 : vector<2x128xf32>
    %c5_21 = arith.constant 5 : index
    %107 = memref.load %arg3[%c5_21] : memref<12xf32, #tpu.memory_space<smem>>
    %108 = vector.broadcast %107 : f32 to vector<2x128xf32>
    %109 = arith.addf %106, %108 : vector<2x128xf32>
    %c21 = arith.constant 21 : index
    %110 = memref.load %arg2[%c21] : memref<48xf32, #tpu.memory_space<smem>>
    %111 = vector.broadcast %110 : f32 to vector<2x128xf32>
    %112 = arith.mulf %3, %111 : vector<2x128xf32>
    %113 = arith.addf %109, %112 : vector<2x128xf32>
    %c25 = arith.constant 25 : index
    %114 = memref.load %arg2[%c25] : memref<48xf32, #tpu.memory_space<smem>>
    %115 = vector.broadcast %114 : f32 to vector<2x128xf32>
    %116 = arith.mulf %5, %115 : vector<2x128xf32>
    %117 = arith.addf %113, %116 : vector<2x128xf32>
    %c29 = arith.constant 29 : index
    %118 = memref.load %arg2[%c29] : memref<48xf32, #tpu.memory_space<smem>>
    %119 = vector.broadcast %118 : f32 to vector<2x128xf32>
    %120 = arith.mulf %7, %119 : vector<2x128xf32>
    %121 = arith.addf %117, %120 : vector<2x128xf32>
    %c18 = arith.constant 18 : index
    %122 = memref.load %arg2[%c18] : memref<48xf32, #tpu.memory_space<smem>>
    %123 = vector.broadcast %122 : f32 to vector<2x128xf32>
    %124 = arith.mulf %1, %123 : vector<2x128xf32>
    %c6_22 = arith.constant 6 : index
    %125 = memref.load %arg3[%c6_22] : memref<12xf32, #tpu.memory_space<smem>>
    %126 = vector.broadcast %125 : f32 to vector<2x128xf32>
    %127 = arith.addf %124, %126 : vector<2x128xf32>
    %c22 = arith.constant 22 : index
    %128 = memref.load %arg2[%c22] : memref<48xf32, #tpu.memory_space<smem>>
    %129 = vector.broadcast %128 : f32 to vector<2x128xf32>
    %130 = arith.mulf %3, %129 : vector<2x128xf32>
    %131 = arith.addf %127, %130 : vector<2x128xf32>
    %c26 = arith.constant 26 : index
    %132 = memref.load %arg2[%c26] : memref<48xf32, #tpu.memory_space<smem>>
    %133 = vector.broadcast %132 : f32 to vector<2x128xf32>
    %134 = arith.mulf %5, %133 : vector<2x128xf32>
    %135 = arith.addf %131, %134 : vector<2x128xf32>
    %c30 = arith.constant 30 : index
    %136 = memref.load %arg2[%c30] : memref<48xf32, #tpu.memory_space<smem>>
    %137 = vector.broadcast %136 : f32 to vector<2x128xf32>
    %138 = arith.mulf %7, %137 : vector<2x128xf32>
    %139 = arith.addf %135, %138 : vector<2x128xf32>
    %c19 = arith.constant 19 : index
    %140 = memref.load %arg2[%c19] : memref<48xf32, #tpu.memory_space<smem>>
    %141 = vector.broadcast %140 : f32 to vector<2x128xf32>
    %142 = arith.mulf %1, %141 : vector<2x128xf32>
    %c7_23 = arith.constant 7 : index
    %143 = memref.load %arg3[%c7_23] : memref<12xf32, #tpu.memory_space<smem>>
    %144 = vector.broadcast %143 : f32 to vector<2x128xf32>
    %145 = arith.addf %142, %144 : vector<2x128xf32>
    %c23 = arith.constant 23 : index
    %146 = memref.load %arg2[%c23] : memref<48xf32, #tpu.memory_space<smem>>
    %147 = vector.broadcast %146 : f32 to vector<2x128xf32>
    %148 = arith.mulf %3, %147 : vector<2x128xf32>
    %149 = arith.addf %145, %148 : vector<2x128xf32>
    %c27 = arith.constant 27 : index
    %150 = memref.load %arg2[%c27] : memref<48xf32, #tpu.memory_space<smem>>
    %151 = vector.broadcast %150 : f32 to vector<2x128xf32>
    %152 = arith.mulf %5, %151 : vector<2x128xf32>
    %153 = arith.addf %149, %152 : vector<2x128xf32>
    %c31 = arith.constant 31 : index
    %154 = memref.load %arg2[%c31] : memref<48xf32, #tpu.memory_space<smem>>
    %155 = vector.broadcast %154 : f32 to vector<2x128xf32>
    %156 = arith.mulf %7, %155 : vector<2x128xf32>
    %157 = arith.addf %153, %156 : vector<2x128xf32>
    %158 = arith.addf %25, %103 : vector<2x128xf32>
    %159 = math.exp %121 : vector<2x128xf32>
    %160 = arith.addf %82, %159 : vector<2x128xf32>
    %161 = arith.mulf %103, %103 : vector<2x128xf32>
    %162 = arith.addf %160, %161 : vector<2x128xf32>
    %163 = arith.addf %61, %139 : vector<2x128xf32>
    %164 = math.exp %157 : vector<2x128xf32>
    %165 = arith.addf %85, %164 : vector<2x128xf32>
    %166 = arith.mulf %139, %139 : vector<2x128xf32>
    %167 = arith.addf %165, %166 : vector<2x128xf32>
    %c32 = arith.constant 32 : index
    %168 = memref.load %arg2[%c32] : memref<48xf32, #tpu.memory_space<smem>>
    %169 = vector.broadcast %168 : f32 to vector<2x128xf32>
    %170 = arith.mulf %1, %169 : vector<2x128xf32>
    %c8_24 = arith.constant 8 : index
    %171 = memref.load %arg3[%c8_24] : memref<12xf32, #tpu.memory_space<smem>>
    %172 = vector.broadcast %171 : f32 to vector<2x128xf32>
    %173 = arith.addf %170, %172 : vector<2x128xf32>
    %c36 = arith.constant 36 : index
    %174 = memref.load %arg2[%c36] : memref<48xf32, #tpu.memory_space<smem>>
    %175 = vector.broadcast %174 : f32 to vector<2x128xf32>
    %176 = arith.mulf %3, %175 : vector<2x128xf32>
    %177 = arith.addf %173, %176 : vector<2x128xf32>
    %c40 = arith.constant 40 : index
    %178 = memref.load %arg2[%c40] : memref<48xf32, #tpu.memory_space<smem>>
    %179 = vector.broadcast %178 : f32 to vector<2x128xf32>
    %180 = arith.mulf %5, %179 : vector<2x128xf32>
    %181 = arith.addf %177, %180 : vector<2x128xf32>
    %c44 = arith.constant 44 : index
    %182 = memref.load %arg2[%c44] : memref<48xf32, #tpu.memory_space<smem>>
    %183 = vector.broadcast %182 : f32 to vector<2x128xf32>
    %184 = arith.mulf %7, %183 : vector<2x128xf32>
    %185 = arith.addf %181, %184 : vector<2x128xf32>
    %c33 = arith.constant 33 : index
    %186 = memref.load %arg2[%c33] : memref<48xf32, #tpu.memory_space<smem>>
    %187 = vector.broadcast %186 : f32 to vector<2x128xf32>
    %188 = arith.mulf %1, %187 : vector<2x128xf32>
    %c9_25 = arith.constant 9 : index
    %189 = memref.load %arg3[%c9_25] : memref<12xf32, #tpu.memory_space<smem>>
    %190 = vector.broadcast %189 : f32 to vector<2x128xf32>
    %191 = arith.addf %188, %190 : vector<2x128xf32>
    %c37 = arith.constant 37 : index
    %192 = memref.load %arg2[%c37] : memref<48xf32, #tpu.memory_space<smem>>
    %193 = vector.broadcast %192 : f32 to vector<2x128xf32>
    %194 = arith.mulf %3, %193 : vector<2x128xf32>
    %195 = arith.addf %191, %194 : vector<2x128xf32>
    %c41 = arith.constant 41 : index
    %196 = memref.load %arg2[%c41] : memref<48xf32, #tpu.memory_space<smem>>
    %197 = vector.broadcast %196 : f32 to vector<2x128xf32>
    %198 = arith.mulf %5, %197 : vector<2x128xf32>
    %199 = arith.addf %195, %198 : vector<2x128xf32>
    %c45 = arith.constant 45 : index
    %200 = memref.load %arg2[%c45] : memref<48xf32, #tpu.memory_space<smem>>
    %201 = vector.broadcast %200 : f32 to vector<2x128xf32>
    %202 = arith.mulf %7, %201 : vector<2x128xf32>
    %203 = arith.addf %199, %202 : vector<2x128xf32>
    %c34 = arith.constant 34 : index
    %204 = memref.load %arg2[%c34] : memref<48xf32, #tpu.memory_space<smem>>
    %205 = vector.broadcast %204 : f32 to vector<2x128xf32>
    %206 = arith.mulf %1, %205 : vector<2x128xf32>
    %c10_26 = arith.constant 10 : index
    %207 = memref.load %arg3[%c10_26] : memref<12xf32, #tpu.memory_space<smem>>
    %208 = vector.broadcast %207 : f32 to vector<2x128xf32>
    %209 = arith.addf %206, %208 : vector<2x128xf32>
    %c38 = arith.constant 38 : index
    %210 = memref.load %arg2[%c38] : memref<48xf32, #tpu.memory_space<smem>>
    %211 = vector.broadcast %210 : f32 to vector<2x128xf32>
    %212 = arith.mulf %3, %211 : vector<2x128xf32>
    %213 = arith.addf %209, %212 : vector<2x128xf32>
    %c42 = arith.constant 42 : index
    %214 = memref.load %arg2[%c42] : memref<48xf32, #tpu.memory_space<smem>>
    %215 = vector.broadcast %214 : f32 to vector<2x128xf32>
    %216 = arith.mulf %5, %215 : vector<2x128xf32>
    %217 = arith.addf %213, %216 : vector<2x128xf32>
    %c46 = arith.constant 46 : index
    %218 = memref.load %arg2[%c46] : memref<48xf32, #tpu.memory_space<smem>>
    %219 = vector.broadcast %218 : f32 to vector<2x128xf32>
    %220 = arith.mulf %7, %219 : vector<2x128xf32>
    %221 = arith.addf %217, %220 : vector<2x128xf32>
    %c35 = arith.constant 35 : index
    %222 = memref.load %arg2[%c35] : memref<48xf32, #tpu.memory_space<smem>>
    %223 = vector.broadcast %222 : f32 to vector<2x128xf32>
    %224 = arith.mulf %1, %223 : vector<2x128xf32>
    %c11_27 = arith.constant 11 : index
    %225 = memref.load %arg3[%c11_27] : memref<12xf32, #tpu.memory_space<smem>>
    %226 = vector.broadcast %225 : f32 to vector<2x128xf32>
    %227 = arith.addf %224, %226 : vector<2x128xf32>
    %c39 = arith.constant 39 : index
    %228 = memref.load %arg2[%c39] : memref<48xf32, #tpu.memory_space<smem>>
    %229 = vector.broadcast %228 : f32 to vector<2x128xf32>
    %230 = arith.mulf %3, %229 : vector<2x128xf32>
    %231 = arith.addf %227, %230 : vector<2x128xf32>
    %c43 = arith.constant 43 : index
    %232 = memref.load %arg2[%c43] : memref<48xf32, #tpu.memory_space<smem>>
    %233 = vector.broadcast %232 : f32 to vector<2x128xf32>
    %234 = arith.mulf %5, %233 : vector<2x128xf32>
    %235 = arith.addf %231, %234 : vector<2x128xf32>
    %c47 = arith.constant 47 : index
    %236 = memref.load %arg2[%c47] : memref<48xf32, #tpu.memory_space<smem>>
    %237 = vector.broadcast %236 : f32 to vector<2x128xf32>
    %238 = arith.mulf %7, %237 : vector<2x128xf32>
    %239 = arith.addf %235, %238 : vector<2x128xf32>
    %240 = arith.addf %158, %185 : vector<2x128xf32>
    %241 = math.exp %203 : vector<2x128xf32>
    %242 = arith.addf %162, %241 : vector<2x128xf32>
    %243 = arith.mulf %185, %185 : vector<2x128xf32>
    %244 = arith.addf %242, %243 : vector<2x128xf32>
    %245 = arith.addf %163, %221 : vector<2x128xf32>
    %246 = math.exp %239 : vector<2x128xf32>
    %247 = arith.addf %167, %246 : vector<2x128xf32>
    %248 = arith.mulf %221, %221 : vector<2x128xf32>
    %249 = arith.addf %247, %248 : vector<2x128xf32>
    %cst = arith.constant 0.333333343 : f32
    %250 = vector.broadcast %cst : f32 to vector<2x128xf32>
    %251 = arith.mulf %240, %250 : vector<2x128xf32>
    %cst_28 = arith.constant 0.333333343 : f32
    %252 = vector.broadcast %cst_28 : f32 to vector<2x128xf32>
    %253 = arith.mulf %245, %252 : vector<2x128xf32>
    %cst_29 = arith.constant 0.333333343 : f32
    %254 = vector.broadcast %cst_29 : f32 to vector<2x128xf32>
    %255 = arith.mulf %244, %254 : vector<2x128xf32>
    %256 = arith.mulf %251, %251 : vector<2x128xf32>
    %257 = arith.subf %255, %256 : vector<2x128xf32>
    %cst_30 = arith.constant 0.333333343 : f32
    %258 = vector.broadcast %cst_30 : f32 to vector<2x128xf32>
    %259 = arith.mulf %249, %258 : vector<2x128xf32>
    %260 = arith.mulf %253, %253 : vector<2x128xf32>
    %261 = arith.subf %259, %260 : vector<2x128xf32>
    %c0_31 = arith.constant 0 : index
    %c0_32 = arith.constant 0 : index
    %c0_33 = arith.constant 0 : index
    %c0_34 = arith.constant 0 : index
    %262 = vector.load %arg5[%c0_31, %c0_32, %c0_33, %c0_34] : memref<1x1x2x128xf32, #tpu.memory_space<vmem>>, vector<1x1x2x128xf32>
    %263 = vector.shape_cast %262 : vector<1x1x2x128xf32> to vector<2x128xf32>
    %264 = vector.shape_cast %251 : vector<2x128xf32> to vector<1x1x2x128xf32>
    tpu.vector_store %arg5[%c0_31, %c0_32, %c0_33, %c0_34], %264 {strides = array<i32>} : memref<1x1x2x128xf32, #tpu.memory_space<vmem>>, vector<1x1x2x128xf32>,
    %c0_35 = arith.constant 0 : index
    %c0_36 = arith.constant 0 : index
    %c0_37 = arith.constant 0 : index
    %c0_38 = arith.constant 0 : index
    %265 = vector.load %arg6[%c0_35, %c0_36, %c0_37, %c0_38] : memref<1x1x2x128xf32, #tpu.memory_space<vmem>>, vector<1x1x2x128xf32>
    %266 = vector.shape_cast %265 : vector<1x1x2x128xf32> to vector<2x128xf32>
    %267 = vector.shape_cast %257 : vector<2x128xf32> to vector<1x1x2x128xf32>
    tpu.vector_store %arg6[%c0_35, %c0_36, %c0_37, %c0_38], %267 {strides = array<i32>} : memref<1x1x2x128xf32, #tpu.memory_space<vmem>>, vector<1x1x2x128xf32>,
    %c0_39 = arith.constant 0 : index
    %c0_40 = arith.constant 0 : index
    %c0_41 = arith.constant 0 : index
    %c0_42 = arith.constant 0 : index
    %268 = vector.load %arg7[%c0_39, %c0_40, %c0_41, %c0_42] : memref<1x1x2x128xf32, #tpu.memory_space<vmem>>, vector<1x1x2x128xf32>
    %269 = vector.shape_cast %268 : vector<1x1x2x128xf32> to vector<2x128xf32>
    %270 = vector.shape_cast %253 : vector<2x128xf32> to vector<1x1x2x128xf32>
    tpu.vector_store %arg7[%c0_39, %c0_40, %c0_41, %c0_42], %270 {strides = array<i32>} : memref<1x1x2x128xf32, #tpu.memory_space<vmem>>, vector<1x1x2x128xf32>,
    %c0_43 = arith.constant 0 : index
    %c0_44 = arith.constant 0 : index
    %c0_45 = arith.constant 0 : index
    %c0_46 = arith.constant 0 : index
    %271 = vector.load %arg8[%c0_43, %c0_44, %c0_45, %c0_46] : memref<1x1x2x128xf32, #tpu.memory_space<vmem>>, vector<1x1x2x128xf32>
    %272 = vector.shape_cast %271 : vector<1x1x2x128xf32> to vector<2x128xf32>
    %273 = vector.shape_cast %261 : vector<2x128xf32> to vector<1x1x2x128xf32>
    tpu.vector_store %arg8[%c0_43, %c0_44, %c0_45, %c0_46], %273 {strides = array<i32>} : memref<1x1x2x128xf32, #tpu.memory_space<vmem>>, vector<1x1x2x128xf32>,
    return
  }
  func.func @transform_0(%arg0: i32, %arg1: i32) -> i32 {
    %c0_i32 = arith.constant 0 : i32
    %c0_i32_0 = arith.constant 0 : i32
    return %c0_i32 : i32
  }
  func.func @transform_1(%arg0: i32, %arg1: i32) -> i32 {
    %c0_i32 = arith.constant 0 : i32
    %c0_i32_0 = arith.constant 0 : i32
    return %c0_i32 : i32
  }
  func.func @transform_2(%arg0: i32, %arg1: i32) -> (i32, i32, i32, i32) {
    %c0_i32 = arith.constant 0 : i32
    %c0_i32_0 = arith.constant 0 : i32
    %c0_i32_1 = arith.constant 0 : i32
    return %arg0, %c0_i32, %arg1, %c0_i32_0 : i32, i32, i32, i32
  }
  func.func @transform_3(%arg0: i32, %arg1: i32) -> (i32, i32, i32, i32) {
    %c0_i32 = arith.constant 0 : i32
    %c0_i32_0 = arith.constant 0 : i32
    %c0_i32_1 = arith.constant 0 : i32
    return %arg0, %c0_i32, %arg1, %c0_i32_0 : i32, i32, i32, i32
  }
  func.func @transform_4(%arg0: i32, %arg1: i32) -> (i32, i32, i32, i32) {
    %c0_i32 = arith.constant 0 : i32
    %c0_i32_0 = arith.constant 0 : i32
    %c0_i32_1 = arith.constant 0 : i32
    return %arg0, %c0_i32, %arg1, %c0_i32_0 : i32, i32, i32, i32
  }
  func.func @transform_5(%arg0: i32, %arg1: i32) -> (i32, i32, i32, i32) {
    %c0_i32 = arith.constant 0 : i32
    %c0_i32_0 = arith.constant 0 : i32
    %c0_i32_1 = arith.constant 0 : i32
    return %arg0, %c0_i32, %arg1, %c0_i32_0 : i32, i32, i32, i32
  }
  func.func @transform_6(%arg0: i32, %arg1: i32) -> (i32, i32, i32, i32) {
    %c0_i32 = arith.constant 0 : i32
    %c0_i32_0 = arith.constant 0 : i32
    %c0_i32_1 = arith.constant 0 : i32
    return %arg0, %c0_i32, %arg1, %c0_i32_0 : i32, i32, i32, i32
  }
}

</mosaic_0001>

<bundles_post_ra>
// kernel: tpu_custom_call.1
= control target key start
LH: loop header
LB: loop body
LE: loop exit
PB: predicated region body
PF: predicated region fallthrough
CT: control target
= control target key end

     0   :  { %s1959_s0 = inlined_call_operand.hbm [shape: f32[48], index: 0, kind: input, shape index: {}]   ;;  %s1960_s1 = inlined_call_operand.vmem [shape: f32[12], index: 1, kind: input, shape index: {}]   ;;  %s1961_s2 = inlined_call_operand.hbm [shape: f32[2,4,2,128], index: 2, kind: input, shape index: {}]   ;;  %s1962_s3 = inlined_call_operand.hbm [shape: f32[2,1,2,128], index: 3, kind: output, shape index: {0}]   ;;  %s1963_s4 = inlined_call_operand.hbm [shape: f32[2,1,2,128], index: 4, kind: output, shape index: {1}]   ;;  %s1964_s5 = inlined_call_operand.hbm [shape: f32[2,1,2,128], index: 5, kind: output, shape index: {2}]   ;;  %s1965_s6 = inlined_call_operand.hbm [shape: f32[2,1,2,128], index: 6, kind: output, shape index: {3}]  }
   0x1   :  { %1977 = sst [smem:[#allocation28_spill]] %s1959_s0 }
   0x2   :  { %1978 = sst [smem:[#allocation29_spill]] %s1960_s1 }
   0x3   :  { %1979 = sst [smem:[#allocation30_spill]] %s1961_s2 }
   0x4   :  { %12 = vsyncpa [#allocation5], 0 }
   0x5   :  { %13 = vsyncpa [#allocation6], 0 }
   0x6   :  { %14 = vsyncpa [#allocation3], 0 }
   0x7   :  { %16 = vsyncpa [#allocation3 + $0x1], 0 }
   0x8   :  { %17 = vsyncpa [#allocation4], 0 }
   0x9   :  { %19 = vsyncpa [#allocation4 + $0x1], 0 }
   0xa   :  { %20 = vsyncpa [#allocation11], 0 }
   0xb   :  { %22 = vsyncpa [#allocation11 + $0x1], 0 }
   0xc   :  { %23 = vsyncpa [#allocation14], 0 }
   0xd   :  { %25 = vsyncpa [#allocation14 + $0x1], 0  ;;  %s1373_s21 = smov 0   ;;  %s1375_s22 = smov 0  }
   0xe   :  { %s1377_s23 = smov 0   ;;  %s1379_s24 = smov 0  }
   0xf   :  { %s1381_s25 = smov 0   ;;  %s1383_s26 = smov 0  }
  0x10 LB: > { %1980 = sst [smem:[#allocation21_spill]] %s1311_s22  ;;  %s1404_s27 = sadd.s32 4294967295, %s1327_s26   ;;  %s1327_s26 = sphi %s1383_s26, %s31_s26   ;;  %s1323_s25 = sphi %s1381_s25, %s2013_s25   ;;  %s1319_s24 = sphi %s1379_s24, %s2012_s24   ;;  %s1315_s23 = sphi %s1377_s23, %s2011_s23   ;;  %s1311_s22 = sphi %s1375_s22, %s2010_s22   ;;  %s1307_s21 = sphi %s1373_s21, %s2009_s21  }
  0x11   : > { %1981 = sst [smem:[#allocation22_spill]] %s1315_s23  ;;  %s1966_s28 = sadd.s32 4294967294, %s1327_s26  }
  0x12   : > { %1982 = sst [smem:[#allocation23_spill]] %s1323_s25  ;;  %p101_p0 = scmp.ne.s32.totalorder %s1315_s23, %s1311_s22 }
  0x13   : > { %1983 = sst [smem:[#allocation24_spill]] %s1327_s26  ;;  %p102_p1 = scmp.eq.s32.totalorder %s1327_s26, 0 }
  0x14   : > { %p107_p2 = scmp.ne.s32.totalorder %s1311_s22, %s1307_s21  ;;  %p1967_p3 = scmp.eq.s32.totalorder %s1404_s27, 0 }
  0x15   : > { %p133_p4 = scmp.eq.s32.totalorder %s1404_s27, 1  ;;  %p103_p5 = por %p102_p1, %p101_p0 }
  0x16   : > { %p139_p6 = scmp.eq.s32.totalorder %s1966_s28, 1  ;;  %p1419_p7 = por %p1967_p3, %p107_p2 }
  0x17   : > { %p1423_p8 = por %p133_p4, %p101_p0  ;;  %p888_p10 = scmp.ge.s32.totalorder %s1327_s26, 1 }
  0x18   : > { %s1984_s30 = scalar_select %p1419_p7, 1, 0 }
  0x19   : > { %s1985_s7 = scalar_select %p1423_p8, 1, 0 }
  0x1a   : > { %p1427_p9 = por %p139_p6, %p107_p2  ;;  %p230_p11 = scmp.lt.s32.totalorder %s1327_s26, 3 }
  0x1b   : > { %p1019_p1 = scmp.lt.s32.totalorder %s1327_s26, 2  ;;  %s1989_s1 = sld [smem:[#allocation29_spill]] }
  0x1c   : > { %s1986_s8 = scalar_select %p1427_p9, 1, 0 }
  0x1d   : > { %p1434_p13 = pnand %p888_p10, %p230_p11  ;;  %p1444_p4 = pnand %p1019_p1, %p103_p5 }
  0x1e   : > { %1987 = sst [smem:[#allocation25_spill]] %s1986_s8  ;;  %s43_s16 = sadd.s32 1, %s1323_s25 }
  0x1f   : > { %p993_p0 = pneg %p1434_p13  ;;  %s1992_s0 = sld [smem:[#allocation28_spill]] }
  0x21   : > { %s252_s12 = sshll.u32 %s1989_s1, 4  ;;  %p1450_p2 = pnand %p993_p0, %p1967_p3  ;;  %s253_s12 = int_to_ptr.vmem [resolvable:$true] %s252_s12 }
  0x23   : > { %p1089_p6 = pneg %p1450_p2 }
  0x25   : > { %s1087_s19 = scalar_lea.hbm %s1992_s0, 16 }
  0x26   : > { %p1088_p5 = scmp.ne.s32.totalorder %s1992_s0, %s1087_s19  ;;  %p1094_p1 = scmp.lt.u32.totalorder %s1087_s19, %s1992_s0 }
  0x28   : > { %p1090_p10 = pnand %p1089_p6, %p1088_p5 }
  0x2a   : > { %p1091_p11 = pneg %p1090_p10 }
  0x2c   : > { %p1096_p0 = pnand %p1094_p1, %p1091_p11 }
  0x2e   : > { %1099 = shalt.err (!%p1096_p0)
}
  0x2f   : > { %s1329_s29 = smov [#allocation2]   ;;  %s1100_s18 = scalar_lea.vmem %s253_s12, 16 }
  0x30   : > { %996 = dma.hbm_to_smem (!%p1450_p2), %s1992_s0, 16, %s1329_s29, [#allocation5]  }
  0x31   : > { %p1101_p12 = scmp.ne.s32.totalorder %s253_s12, %s1100_s18  ;;  %p1108_p8 = scmp.lt.s32.totalorder %s253_s12, %s253_s12 }
  0x32   : > { %p1109_p5 = scmp.lt.s32.totalorder %s1100_s18, %s1100_s18 }
  0x33   : > { %p1103_p3 = pnand %p1101_p12, %p1089_p6 }
  0x34   : > { %p1110_p10 = por %p1109_p5, %p1108_p8 }
  0x35   : > { %p1104_p9 = pneg %p1103_p3 }
  0x37   : > { %p1111_p7 = pnand %p1110_p10, %p1104_p9 }
  0x39   : > { %1114 = shalt.err (!%p1111_p7)
}
  0x3a   : > { %s1330_s28 = smov [#allocation7]   ;;  %p45_p11 = scmp.ge.s32.totalorder %s43_s16, 2 }
  0x3b   : > { %999 = dma.vmem_to_smem (!%p1450_p2), %s253_s12, 16, %s1330_s28, [#allocation6]  }
  0x3c   : > { %s1993_s29 = sand.u32 1, %s1315_s23   ;;  %s974_s19 = sshll.u32 %s1323_s25, 7 }
  0x3d   : > { %s892_s15 = sshll.u32 %s1993_s29, 3  ;;  %s2015_s16 = smov (%p45_p11, %s43_s16), 0 }
  0x3e   : > { %1994 = sst [smem:[#allocation26_spill]] %s2015_s16  ;;  %s1995_s2 = sld [smem:[#allocation30_spill]] }
  0x3f   : > { %s89_s11 = ssub.s32 %s1323_s25, %s2015_s16  ;;  %s267_s17 = scalar_lea.vmem [#allocation8], %s892_s15 }
  0x40   : > { %s275_s12 = sshll.u32 %s267_s17, 4  ;;  %p92_p3 = scmp.eq.s32.totalorder %s89_s11, 0  ;;  %s1486_s12 = int_to_ptr.vmem [resolvable:$true] %s275_s12 }
  0x41   : > { %s1996_s18 = sadd.s32 1, %s1315_s23  ;;  %s1495_s0 = scalar_lea.sflag [#allocation3], %s1993_s29 }
  0x42   : > { %s1491_s28 = scalar_select %p92_p3, %s1315_s23, %s1996_s18  }
  0x43   : > { %p1117_p8 = pneg %p1444_p4 }
  0x44   : > { %s1482_s14 = scalar_lea.hbm %s1995_s2, %s974_s19  ;;  %1997 = sst [smem:[#allocation27_spill]] %s1491_s28 }
  0x45   : > { %s1115_s20 = scalar_lea.hbm %s1482_s14, 128  ;;  %s1120_s10 = scalar_lea.hbm %s1995_s2, 256 }
  0x46   : > { %p1116_p7 = scmp.ne.s32.totalorder %s1482_s14, %s1115_s20  ;;  %p1121_p2 = scmp.lt.u32.totalorder %s1482_s14, %s1995_s2 }
  0x47   : > { %p1122_p6 = scmp.lt.u32.totalorder %s1120_s10, %s1115_s20  ;;  %p1124_p0 = scmp.lt.u32.totalorder %s1115_s20, %s1482_s14 }
  0x48   : > { %p1118_p9 = pnand %p1117_p8, %p1116_p7 }
  0x49   : > { %p1123_p1 = por %p1122_p6, %p1121_p2 }
  0x4a   : > { %p1119_p12 = pneg %p1118_p9 }
  0x4b   : > { %p1125_p5 = por %p1124_p0, %p1123_p1 }
  0x4d   : > { %p1126_p10 = pnand %p1125_p5, %p1119_p12 }
  0x4f   : > { %1129 = shalt.err (!%p1126_p10)
}
  0x50   : > { %s1130_s18 = scalar_lea.vmem %s1486_s12, 128  ;;  %s1331_s29 = smov [#allocation8]  }
  0x51   : > { %p1131_p11 = scmp.ne.s32.totalorder %s1486_s12, %s1130_s18  ;;  %s1135_s19 = sshll.u32 %s1331_s29, 4  ;;  %s1136_s19 = int_to_ptr.vmem [resolvable:$false] %s1135_s19 }
  0x52   : > { %s1137_s15 = scalar_lea.vmem %s1136_s19, 256  ;;  %p1138_p9 = scmp.lt.s32.totalorder %s1486_s12, %s1136_s19 }
  0x53   : > { %p1133_p3 = pnand %p1131_p11, %p1117_p8  ;;  %p1139_p2 = scmp.lt.s32.totalorder %s1137_s15, %s1130_s18 }
  0x55   : > { %p1134_p7 = pneg %p1133_p3  ;;  %p1140_p6 = por %p1139_p2, %p1138_p9 }
  0x57   : > { %p1141_p1 = pnand %p1140_p6, %p1134_p7 }
  0x59   : > { %1144 = shalt.err (!%p1141_p1)
}
  0x5a   : > { %s1332_s20 = smov 32   ;;  %s1333_s10 = smov 2  }
  0x5b   : > { %1003 = dma.hbm_to_vmem [thread:$0]  (!%p1444_p4), %s1482_s14, 128, %s1486_s12, %s1495_s0, %s1332_s20, %s1332_s20, %s1333_s10  }
  0x5c   : > { %287 = sbr.rel (%p1434_p13) target bundleno = 253 (0xfd), region = 32  ;;  %p1998_p8 = scmp.eq.s32.totalorder (!%p1434_p13), %s1404_s27, 0 }
  0x63   : > { %1282 = dma.done.wait (%p1998_p8), [#allocation5], 16   ;;  %p1999_p12 = pmov %p1998_p8 }
  0x64   : > { %p2000_p0 = pmov %p1998_p8 }
  0x65   : > { %1284 = vsyncadd (%p1999_p12), [#allocation5], 4294967280 }
  0x66   : > { %1286 = dma.done.wait (%p2000_p0), [#allocation6], 16   ;;  %p2001_p5 = pmov %p2000_p0 }
  0x67   : > { %s1534_s11 = sand.u32 1, %s1311_s22   ;;  %p2002_p13 = scmp.ne.s32.totalorder %s1984_s30, 0 }
  0x68   : > { %1288 = vsyncadd (%p2001_p5), [#allocation6], 4294967280  ;;  %s898_s0 = sshll.u32 %s1534_s11, 3  ;;  %s298_s9 = scalar_lea.sflag [#allocation3], %s1534_s11 }
  0x69   : > { %s1538_s13 = scalar_lea.vmem [#allocation8], %s898_s0 }
  0x6a   : > { %1290 = dma.done.wait (%p2002_p13), %s298_s9, 128  }
  0x6b   : > { %1292 = vsyncadd (%p2002_p13), %s298_s9, 4294967168 }
  0x6c   : > { %306 = sfence }
  0x6d   : > { %s353_s14 = sld [smem:[#allocation2]]  ;;  %s906_s17 = sld [smem:[#allocation2 + $0x4]]  ;;  %v1559_v0 = vld [vmem:[%s1538_s13] sm:$0x3]  ;;  %v1566_v3 = vld [vmem:[%s1538_s13 + $0x2] sm:$0x3] }
  0x6e   : > { %s356_s12 = sld [smem:[#allocation7]]  ;;  %s1544_s29 = sld [smem:[#allocation2 + $0xc]]  ;;  %v1574_v7 = vld [vmem:[%s1538_s13 + $0x4] sm:$0x3]  ;;  %v1583_v11 = vld [vmem:[%s1538_s13 + $0x6] sm:$0x3] }
  0x6f   : > { %s907_s18 = sld [smem:[#allocation2 + $0x8]]  ;;  %s909_s19 = sld [smem:[#allocation2 + $0x1]] }
  0x70   : > { %s1546_s15 = sld [smem:[#allocation7 + $0x1]]  ;;  %s1548_s20 = sld [smem:[#allocation2 + $0x5]] }
  0x71   : > { %s1550_s10 = sld [smem:[#allocation2 + $0x9]]  ;;  %s1552_s0 = sld [smem:[#allocation2 + $0xd]] }
  0x72   : > { %s1554_s30 = sld [smem:[#allocation2 + $0x10]]  ;;  %s1556_s9 = sld [smem:[#allocation7 + $0x4]] }
  0x73   : > { %v354_v1 = vstv %s353_s14  ;;  %s1561_s1 = sld [smem:[#allocation2 + $0x14]]  ;;  %s1563_s2 = sld [smem:[#allocation2 + $0x18]]  ;;  %v360_v5 = vstv %s906_s17 }
  0x74   : > { %v357_v2 = vstv %s356_s12  ;;  %v355_v4 = vmul.f32 %v354_v1, %v1559_v0  ;;  %s1569_s16 = sld [smem:[#allocation2 + $0x1c]]  ;;  %s1571_s25 = sld [smem:[#allocation2 + $0x11]]  ;;  %v361_v8 = vmul.f32 %v1566_v3, %v360_v5  ;;  %v368_v9 = vstv %s1544_s29 }
  0x75   : > { %v364_v6 = vstv %s907_s18  ;;  %v372_v10 = vstv %s909_s19  ;;  %s1578_s14 = sld [smem:[#allocation7 + $0x5]]  ;;  %s1588_s17 = sld [smem:[#allocation2 + $0x19]]  ;;  %v369_v16 = vmul.f32 %v1583_v11, %v368_v9 }
  0x76   : > { %s1580_s12 = sld [smem:[#allocation2 + $0x15]]  ;;  %v358_v12 = vadd.f32 %v357_v2, %v355_v4  ;;  %v365_v13 = vmul.f32 %v1574_v7, %v364_v6  ;;  %v373_v14 = vmul.f32 %v372_v10, %v1559_v0  ;;  %v375_v15 = vstv %s1546_s15  ;;  %s1596_s13 = sld [smem:[#allocation2 + $0x20]] }
  0x77   : > { %v378_v17 = vstv %s1548_s20  ;;  %v382_v18 = vstv %s1550_s10  ;;  %v386_v19 = vstv %s1552_s0  ;;  %s1594_s18 = sld [smem:[#allocation2 + $0x1d]]  ;;  %s1600_s29 = sld [smem:[#allocation7 + $0x8]] }
  0x78   : > { %v362_v20 = vadd.f32 %v361_v8, %v358_v12  ;;  %v376_v21 = vadd.f32 %v375_v15, %v373_v14  ;;  %v379_v22 = vmul.f32 %v1566_v3, %v378_v17  ;;  %v383_v23 = vmul.f32 %v1574_v7, %v382_v18  ;;  %s1606_s19 = sld [smem:[#allocation2 + $0x24]]  ;;  %s1608_s15 = sld [smem:[#allocation2 + $0x28]] }
  0x79   : > { %v387_v24 = vmul.f32 %v1583_v11, %v386_v19  ;;  %v434_v25 = vstv %s1554_s30  ;;  %v437_v26 = vstv %s1556_s9  ;;  %v440_v27 = vstv %s1561_s1  ;;  %s1615_s20 = sld [smem:[#allocation2 + $0x2c]]  ;;  %s1617_s10 = sld [smem:[#allocation2 + $0x21]] }
  0x7a   : > { %v366_v28 = vadd.f32 %v365_v13, %v362_v20  ;;  %v380_v29 = vadd.f32 %v379_v22, %v376_v21  ;;  %v435_v30 = vmul.f32 %v434_v25, %v1559_v0  ;;  %v441_v31 = vmul.f32 %v1566_v3, %v440_v27  ;;  %s1624_s1 = sld [smem:[#allocation7 + $0x9]]  ;;  %s1637_s0 = sld [smem:[#allocation2 + $0x2]] }
  0x7b   : > { %v444_v32 = vstv %s1563_s2  ;;  %v448_v33 = vstv %s1569_s16  ;;  %v452_v34 = vstv %s1571_s25  ;;  %v455_v38 = vstv %s1578_s14  ;;  %s1626_s2 = sld [smem:[#allocation2 + $0x25]]  ;;  %s1630_s25 = sld [smem:[#allocation2 + $0x29]] }
  0x7c   : > { %v384_v35 = vadd.f32 %v383_v23, %v380_v29  ;;  %v438_v36 = vadd.f32 %v437_v26, %v435_v30  ;;  %v445_v37 = vmul.f32 %v1574_v7, %v444_v32  ;;  %v370_v39 = vadd.f32 %v369_v16, %v366_v28  ;;  %s1632_s16 = sld [smem:[#allocation2 + $0x2d]]  ;;  %s1641_s30 = sld [smem:[#allocation7 + $0x2]] }
  0x7d   : > { %v453_v40 = vmul.f32 %v452_v34, %v1559_v0  ;;  %v458_v41 = vstv %s1580_s12  ;;  %v462_v42 = vstv %s1588_s17  ;;  %v449_v45 = vmul.f32 %v1583_v11, %v448_v33  ;;  %s1643_s9 = sld [smem:[#allocation2 + $0x6]]  ;;  %s1646_s14 = sshll.u32 %s1534_s11, 1 }
  0x7e   : > { %v388_v43 = vadd.f32 %v387_v24, %v384_v35  ;;  %v442_v44 = vadd.f32 %v441_v31, %v438_v36  ;;  %v459_v46 = vmul.f32 %v1566_v3, %v458_v41  ;;  %v463_v48 = vmul.f32 %v1574_v7, %v462_v42  ;;  %s1652_s12 = sld [smem:[#allocation2 + $0xa]]  ;;  %s1654_s17 = sld [smem:[#allocation2 + $0xe]] }
  0x7f   : > { %v456_v47 = vadd.f32 %v455_v38, %v453_v40  ;;  %v466_v49 = vstv %s1594_s18  ;;  %v518_v50 = vstv %s1596_s13  ;;  %v521_v56 = vstv %s1600_s29  ;;  %s1659_s18 = sld [smem:[#allocation2 + $0x3]]  ;;  %s1664_s29 = sld [smem:[#allocation2 + $0x7]] }
  0x80   : > { %v425_v51 = vmul.f32 1.442695, %v388_v43  ;;  %v446_v52 = vadd.f32 %v445_v37, %v442_v44  ;;  %v467_v53 = vmul.f32 %v1583_v11, %v466_v49  ;;  %v519_v54 = vmul.f32 %v518_v50, %v1559_v0  ;;  %s1662_s13 = sld [smem:[#allocation7 + $0x3]]  ;;  %s1742_s28 = sld [smem:[#allocation2 + $0x1f]] }
  0x81   : > { %v460_v55 = vadd.f32 %v459_v46, %v456_v47  ;;  %v524_v57 = vstv %s1606_s19  ;;  %v528_v58 = vstv %s1608_s15  ;;  %v532_v1 = vstv %s1615_s20  ;;  %s1672_s19 = sld [smem:[#allocation2 + $0xb]]  ;;  %s1674_s15 = sld [smem:[#allocation2 + $0xf]] }
  0x82   : > { %1075 = vpow2.f32 %v425_v51  ;;  %v450_v59 = vadd.f32 %v449_v45, %v446_v52  ;;  %v522_v60 = vadd.f32 %v521_v56, %v519_v54  ;;  %v525_v61 = vmul.f32 %v1566_v3, %v524_v57  ;;  %s1677_s20 = sld [smem:[#allocation2 + $0x12]]  ;;  %s614_s23 = scalar_lea.sflag [#allocation4], %s1534_s11 }
  0x83   : > { %v464_v62 = vadd.f32 %v463_v48, %v460_v55  ;;  %v529_v63 = vmul.f32 %v1574_v7, %v528_v58  ;;  %v536_v2 = vstv %s1617_s10  ;;  %v533_v6 = vmul.f32 %v1583_v11, %v532_v1  ;;  %s1682_s10 = sld [smem:[#allocation7 + $0x6]]  ;;  %p2003_p10 = scmp.ne.s32.totalorder %s1985_s7, 0 }
  0x84   : > { %v505_v4 = vadd.f32 %v450_v59, %v370_v39  ;;  %v526_v5 = vadd.f32 %v525_v61, %v522_v60  ;;  %v537_v9 = vmul.f32 %v536_v2, %v1559_v0  ;;  %v539_v10 = vstv %s1624_s1  ;;  %s1684_s1 = sld [smem:[#allocation2 + $0x16]] }
  0x85   : > { %v468_v8 = vadd.f32 %v467_v53, %v464_v62  ;;  %v542_v12 = vstv %s1626_s2  ;;  %v546_v15 = vstv %s1630_s25  ;;  %v550_v16 = vstv %s1632_s16  ;;  %s324_s2 = scalar_lea.vmem [#allocation9], %s1646_s14  ;;  %s1689_s16 = sld [smem:[#allocation2 + $0x1a]] }
  0x86   : > { %v530_v13 = vadd.f32 %v529_v63, %v526_v5  ;;  %v543_v14 = vmul.f32 %v1566_v3, %v542_v12  ;;  %v427_v17 = vmul.f32 %v370_v39, %v370_v39  ;;  %v540_v19 = vadd.f32 %v539_v10, %v537_v9  ;;  %s643_s25 = sshll.u32 %s324_s2, 4  ;;  %s1702_s25 = int_to_ptr.vmem [resolvable:$true] %s643_s25 }
  0x87   : > { %v506_v18 = vmul.f32 1.442695, %v468_v8  ;;  %v547_v20 = vmul.f32 %v1574_v7, %v546_v15  ;;  %v390_v22 = vstv %s1637_s0  ;;  %v393_v23 = vstv %s1641_s30  ;;  %s1695_s0 = sld [smem:[#allocation2 + $0x1e]]  ;;  %s1697_s30 = sld [smem:[#allocation2 + $0x22]] }
  0x88   : > { %v534_v21 = vadd.f32 %v533_v6, %v530_v13  ;;  %v396_v24 = vstv %s1643_s9  ;;  %v544_v25 = vadd.f32 %v543_v14, %v540_v19  ;;  %v551_v26 = vmul.f32 %v1583_v11, %v550_v16  ;;  %s1707_s9 = sld [smem:[#allocation7 + $0xa]]  ;;  %s1145_s22 = scalar_lea.vmem %s1702_s25, 32 }
  0x89   : > { %1077 = vpow2.f32 %v506_v18  ;;  %v391_v27 = vmul.f32 %v390_v22, %v1559_v0  ;;  %v1691_v28 = vmul.f32 %v450_v59, %v450_v59  ;;  %v400_v30 = vstv %s1652_s12  ;;  %s1714_s12 = sld [smem:[#allocation2 + $0x26]]  ;;  %p1146_p4 = scmp.ne.s32.totalorder %s1702_s25, %s1145_s22 }
  0x8a   : > { %v589_v29 = vadd.f32 %v534_v21, %v505_v4  ;;  %v404_v31 = vstv %s1654_s17  ;;  %v548_v32 = vadd.f32 %v547_v20, %v544_v25  ;;  %v1699_v33 = vmul.f32 %v534_v21, %v534_v21  ;;  %s1716_s17 = sld [smem:[#allocation2 + $0x2a]] }
  0x8b   : > { %v394_v34 = vadd.f32 %v393_v23, %v391_v27  ;;  %v397_v35 = vmul.f32 %v1566_v3, %v396_v24  ;;  %v408_v38 = vstv %s1659_s18  ;;  %v411_v39 = vstv %s1662_s13  ;;  %s1721_s18 = sld [smem:[#allocation2 + $0x2e]]  ;;  %s1723_s13 = sld [smem:[#allocation2 + $0x13]] }
  0x8c   : > { %v1076_v36 = vpop.eup %1075  ;;  %v601_v37 = vmul.f32 0.33333334, %v589_v29  ;;  %v414_v40 = vstv %s1664_s29  ;;  %v552_v41 = vadd.f32 %v551_v26, %v548_v32  ;;  %v401_v42 = vmul.f32 %v1574_v7, %v400_v30  ;;  %s1726_s29 = sld [smem:[#allocation7 + $0x7]]  ;;  %p1147_p11 = pnand %p1146_p4, %p2003_p10 }
  0x8d   : > { %v1711_v43 = vmul.f32 %v1583_v11, %v404_v31  ;;  %v409_v44 = vmul.f32 %v408_v38, %v1559_v0  ;;  %v428_v45 = vadd.f32 %v1076_v36, %v427_v17  ;;  %v415_v46 = vmul.f32 %v1566_v3, %v414_v40 }
  0x8e   : > { %609 = vst [vmem:[%s324_s2] sm:$0x3] %v601_v37  ;;  %v418_v47 = vstv %s1672_s19  ;;  %v422_v48 = vstv %s1674_s15  ;;  %v590_v49 = vmul.f32 1.442695, %v552_v41  ;;  %v398_v50 = vadd.f32 %v397_v35, %v394_v34  ;;  %s1728_s2 = sld [smem:[#allocation2 + $0x17]]  ;;  %s1735_s19 = sld [smem:[#allocation2 + $0x1b]] }
  0x8f   : > { %v412_v51 = vadd.f32 %v411_v39, %v409_v44  ;;  %v419_v52 = vmul.f32 %v1574_v7, %v418_v47  ;;  %v1730_v53 = vmul.f32 %v601_v37, %v601_v37  ;;  %v470_v54 = vstv %s1677_s20  ;;  %s1738_s15 = sshll.u32 %s1319_s24, 5  ;;  %s1748_s24 = sld [smem:[#allocation2 + $0x23]] }
  0x90   : > { %v473_v55 = vstv %s1682_s10  ;;  %v476_v56 = vstv %s1684_s1  ;;  %1079 = vpow2.f32 %v590_v49  ;;  %v423_v58 = vmul.f32 %v1583_v11, %v422_v48  ;;  %s1754_s1 = scalar_lea.hbm %s1962_s3, %s1738_s15  ;;  %p1148_p3 = pneg %p1147_p11 }
  0x91   : > { %v416_v57 = vadd.f32 %v415_v46, %v412_v51  ;;  %v471_v59 = vmul.f32 %v470_v54, %v1559_v0  ;;  %v477_v60 = vmul.f32 %v1566_v3, %v476_v56  ;;  %v480_v61 = vstv %s1689_s16  ;;  %s1334_s16 = smov [#allocation9]  }
  0x92   : > { %v484_v62 = vstv %s1695_s0  ;;  %v554_v63 = vstv %s1697_s30  ;;  %v402_v2 = vadd.f32 %v401_v42, %v398_v50  ;;  %v481_v6 = vmul.f32 %v1574_v7, %v480_v61  ;;  %s1149_s0 = sshll.u32 %s1334_s16, 4  ;;  %s1150_s0 = int_to_ptr.vmem [resolvable:$false] %s1149_s0 }
  0x93   : > { %v1078_v1 = vpop.eup %1077  ;;  %v420_v4 = vadd.f32 %v419_v52, %v416_v57  ;;  %v474_v5 = vadd.f32 %v473_v55, %v471_v59  ;;  %s1151_s30 = scalar_lea.vmem %s1150_s0, 64  ;;  %p1152_p7 = scmp.lt.s32.totalorder %s1702_s25, %s1150_s0 }
  0x94   : > { %p1153_p9 = scmp.lt.s32.totalorder %s1151_s30, %s1145_s22 }
  0x96   : > { %p1154_p2 = por %p1153_p9, %p1152_p7 }
  0x98   : > { %p1155_p6 = pnand %p1154_p2, %p1148_p3 }
  0x9a   : > { %1158 = shalt.err (!%p1155_p6)
}
  0x9b   : > { %s1159_s20 = scalar_lea.hbm %s1754_s1, 32  ;;  %s1163_s16 = scalar_lea.hbm %s1962_s3, 64 }
  0x9c   : > { %p1160_p1 = scmp.ne.s32.totalorder %s1754_s1, %s1159_s20  ;;  %p1164_p0 = scmp.lt.u32.totalorder %s1754_s1, %s1962_s3 }
  0x9d   : > { %p1165_p5 = scmp.lt.u32.totalorder %s1163_s16, %s1159_s20  ;;  %p1167_p4 = scmp.lt.u32.totalorder %s1159_s20, %s1754_s1 }
  0x9e   : > { %p1161_p8 = pnand %p1160_p1, %p2003_p10 }
  0x9f   : > { %p1166_p13 = por %p1165_p5, %p1164_p0 }
  0xa0   : > { %p1162_p12 = pneg %p1161_p8 }
  0xa1   : > { %p1168_p11 = por %p1167_p4, %p1166_p13 }
  0xa3   : > { %p1169_p3 = pnand %p1168_p11, %p1162_p12 }
  0xa5   : > { %1172 = shalt.err (!%p1169_p3)
}
  0xa6   : > { %985 = dma.vmem_to_hbm [thread:$0]  (%p2003_p10), %s1702_s25, 32, %s1754_s1, %s614_s23   ;;  %v508_v8 = vadd.f32 %v1078_v1, %v428_v45  ;;  %v485_v9 = vmul.f32 %v1583_v11, %v484_v62  ;;  %v555_v10 = vmul.f32 %v554_v63, %v1559_v0  ;;  %v557_v12 = vstv %s1707_s9  ;;  %v1080_v38 = vpop.eup %1079 }
  0xa7   : > { %s1782_s22 = sld [smem:[#allocation7 + $0xb]]  ;;  %v424_v13 = vadd.f32 %v423_v58, %v420_v4  ;;  %v478_v14 = vadd.f32 %v477_v60, %v474_v5  ;;  %v560_v15 = vstv %s1714_s12  ;;  %v564_v16 = vstv %s1716_s17  ;;  %s1786_s26 = sld [smem:[#allocation2 + $0x27]] }
  0xa8   : > { %s1788_s8 = sld [smem:[#allocation2 + $0x2b]]  ;;  %v510_v17 = vadd.f32 %v1691_v28, %v508_v8  ;;  %v558_v18 = vadd.f32 %v557_v12, %v555_v10  ;;  %v561_v19 = vmul.f32 %v1566_v3, %v560_v15  ;;  %v565_v20 = vmul.f32 %v1574_v7, %v564_v16  ;;  %s1795_s23 = sld [smem:[#allocation2 + $0x2f]] }
  0xa9   : > { %v429_v21 = vmul.f32 1.442695, %v424_v13  ;;  %v482_v22 = vadd.f32 %v481_v6, %v478_v14  ;;  %v568_v23 = vstv %s1721_s18  ;;  %v488_v24 = vstv %s1723_s13  ;;  %s331_s25 = scalar_lea.vmem [#allocation10], %s1646_s14  ;;  %s338_s12 = scalar_lea.vmem [#allocation12], %s1646_s14 }
  0xaa   : > { %v562_v25 = vadd.f32 %v561_v19, %v558_v18  ;;  %v569_v26 = vmul.f32 %v1583_v11, %v568_v23  ;;  %v489_v27 = vmul.f32 %v488_v24, %v1559_v0  ;;  %v491_v28 = vstv %s1726_s29  ;;  %s657_s9 = sshll.u32 %s331_s25, 4  ;;  %s671_s17 = sshll.u32 %s338_s12, 4  ;;  %s1830_s9 = int_to_ptr.vmem [resolvable:$true] %s657_s9  ;;  %s1841_s17 = int_to_ptr.vmem [resolvable:$true] %s671_s17 }
  0xab   : > { %v1801_v29 = vadd.f32 %v1711_v43, %v402_v2  ;;  %v1803_v30 = vadd.f32 %v485_v9, %v482_v22  ;;  %v494_v31 = vstv %s1728_s2  ;;  %v498_v32 = vstv %s1735_s19  ;;  %s1839_s13 = scalar_lea.hbm %s1963_s4, %s1738_s15  ;;  %s1847_s19 = scalar_lea.hbm %s1964_s5, %s1738_s15 }
  0xac   : > { %v566_v34 = vadd.f32 %v565_v20, %v562_v25  ;;  %v492_v35 = vadd.f32 %v491_v28, %v489_v27  ;;  %v495_v36 = vmul.f32 %v1566_v3, %v494_v31  ;;  %v499_v37 = vmul.f32 %v1574_v7, %v498_v32  ;;  %s1173_s1 = scalar_lea.vmem %s1830_s9, 32  ;;  %s1335_s30 = smov [#allocation10]  }
  0xad   : > { %1081 = vpow2.f32 %v429_v21  ;;  %v511_v39 = vadd.f32 %v1803_v30, %v1801_v29  ;;  %v502_v40 = vstv %s1742_s28  ;;  %v572_v41 = vstv %s1748_s24  ;;  %s618_s28 = sand.u32 1, %s1404_s27   ;;  %p1174_p7 = scmp.ne.s32.totalorder %s1830_s9, %s1173_s1 }
  0xae   : > { %v592_v42 = vadd.f32 %v1080_v38, %v510_v17  ;;  %v1813_v43 = vadd.f32 %v569_v26, %v566_v34  ;;  %v496_v44 = vadd.f32 %v495_v36, %v492_v35  ;;  %v503_v45 = vmul.f32 %v1583_v11, %v502_v40  ;;  %s1849_s24 = scalar_lea.sflag [#allocation11], %s618_s28  ;;  %s1177_s20 = sshll.u32 %s1335_s30, 4  ;;  %s1178_s20 = int_to_ptr.vmem [resolvable:$false] %s1177_s20 }
  0xaf   : > { %v573_v46 = vmul.f32 %v572_v41, %v1559_v0  ;;  %v575_v47 = vstv %s1782_s22  ;;  %v578_v48 = vstv %s1786_s26  ;;  %v582_v49 = vstv %s1788_s8  ;;  %p1175_p9 = pnand %p1174_p7, %p2003_p10  ;;  %s1179_s10 = scalar_lea.vmem %s1178_s20, 64 }
  0xb0   : > { %v594_v50 = vadd.f32 %v1699_v33, %v592_v42  ;;  %v595_v51 = vadd.f32 %v1813_v43, %v511_v39  ;;  %v500_v52 = vadd.f32 %v499_v37, %v496_v44  ;;  %v579_v54 = vmul.f32 %v1566_v3, %v578_v48  ;;  %p1180_p6 = scmp.lt.s32.totalorder %s1830_s9, %s1178_s20  ;;  %p1181_p1 = scmp.lt.s32.totalorder %s1179_s10, %s1173_s1 }
  0xb1   : > { %v576_v55 = vadd.f32 %v575_v47, %v573_v46  ;;  %v583_v56 = vmul.f32 %v1574_v7, %v582_v49  ;;  %v586_v57 = vstv %s1795_s23  ;;  %p1176_p2 = pneg %p1175_p9 }
  0xb2   : > { %v603_v0 = vmul.f32 0.33333334, %v594_v50  ;;  %v1827_v58 = vmul.f32 0.33333334, %v595_v51  ;;  %v504_v33 = vadd.f32 %v503_v45, %v500_v52  ;;  %v587_v3 = vmul.f32 %v1583_v11, %v586_v57  ;;  %p1182_p8 = por %p1181_p1, %p1180_p6 }
  0xb3   : > { %v580_v59 = vadd.f32 %v579_v54, %v576_v55 }
  0xb4   : > { %v605_v60 = vsub.f32 %v603_v0, %v1730_v53  ;;  %611 = vst [vmem:[%s338_s12] sm:$0x3] %v1827_v58  ;;  %v512_v7 = vmul.f32 1.442695, %v504_v33  ;;  %p1183_p12 = pnand %p1182_p8, %p1176_p2 }
  0xb5   : > { %v584_v61 = vadd.f32 %v583_v56, %v580_v59 }
  0xb6   : > { %610 = vst [vmem:[%s331_s25] sm:$0x3] %v605_v60  ;;  %1083 = vpow2.f32 %v512_v7 }
  0xb7   : > { %v1082_v11 = vpop.eup %1081  ;;  %v588_v53 = vadd.f32 %v587_v3, %v584_v61 }
  0xb8   : > { %1186 = shalt.err (!%p1183_p12)
}
  0xb9   : > { %s1187_s16 = scalar_lea.hbm %s1839_s13, 32  ;;  %s1191_s26 = scalar_lea.hbm %s1963_s4, 64 }
  0xba   : > { %p1188_p0 = scmp.ne.s32.totalorder %s1839_s13, %s1187_s16  ;;  %p1192_p4 = scmp.lt.u32.totalorder %s1839_s13, %s1963_s4 }
  0xbb   : > { %p1193_p11 = scmp.lt.u32.totalorder %s1191_s26, %s1187_s16  ;;  %p1195_p7 = scmp.lt.u32.totalorder %s1187_s16, %s1839_s13 }
  0xbc   : > { %p1189_p5 = pnand %p1188_p0, %p2003_p10 }
  0xbd   : > { %p1194_p3 = por %p1193_p11, %p1192_p4 }
  0xbe   : > { %p1190_p13 = pneg %p1189_p5 }
  0xbf   : > { %p1196_p9 = por %p1195_p7, %p1194_p3 }
  0xc1   : > { %p1197_p2 = pnand %p1196_p9, %p1190_p13 }
  0xc3   : > { %1200 = shalt.err (!%p1197_p2)
}
  0xc4   : > { %986 = dma.vmem_to_hbm [thread:$0]  (%p2003_p10), %s1830_s9, 32, %s1839_s13, %s1849_s24  }
  0xc5   : > { %s1201_s25 = scalar_lea.vmem %s1841_s17, 32  ;;  %s1336_s28 = smov [#allocation12]  }
  0xc6   : > { %p1202_p6 = scmp.ne.s32.totalorder %s1841_s17, %s1201_s25  ;;  %s1205_s12 = sshll.u32 %s1336_s28, 4  ;;  %s1206_s12 = int_to_ptr.vmem [resolvable:$false] %s1205_s12 }
  0xc7   : > { %s1207_s27 = scalar_lea.vmem %s1206_s12, 64  ;;  %p1208_p12 = scmp.lt.s32.totalorder %s1841_s17, %s1206_s12 }
  0xc8   : > { %p1203_p1 = pnand %p1202_p6, %p2003_p10  ;;  %p1209_p0 = scmp.lt.s32.totalorder %s1207_s27, %s1201_s25 }
  0xca   : > { %p1204_p8 = pneg %p1203_p1  ;;  %p1210_p5 = por %p1209_p0, %p1208_p12 }
  0xcc   : > { %p1211_p13 = pnand %p1210_p5, %p1204_p8 }
  0xce   : > { %1214 = shalt.err (!%p1211_p13)
}
  0xcf   : > { %s1215_s9 = scalar_lea.hbm %s1847_s19, 32  ;;  %s1219_s29 = scalar_lea.hbm %s1964_s5, 64 }
  0xd0   : > { %p1216_p4 = scmp.ne.s32.totalorder %s1847_s19, %s1215_s9  ;;  %p1220_p7 = scmp.lt.u32.totalorder %s1847_s19, %s1964_s5 }
  0xd1   : > { %p1221_p9 = scmp.lt.u32.totalorder %s1219_s29, %s1215_s9  ;;  %p1223_p6 = scmp.lt.u32.totalorder %s1215_s9, %s1847_s19 }
  0xd2   : > { %p1217_p11 = pnand %p1216_p4, %p2003_p10 }
  0xd3   : > { %p1222_p2 = por %p1221_p9, %p1220_p7 }
  0xd4   : > { %p1218_p3 = pneg %p1217_p11 }
  0xd5   : > { %p1224_p1 = por %p1223_p6, %p1222_p2 }
  0xd7   : > { %p1225_p8 = pnand %p1224_p1, %p1218_p3 }
  0xd9   : > { %1228 = shalt.err (!%p1225_p8)
}
  0xda   : > { %987 = dma.vmem_to_hbm [thread:$0]  (%p2003_p10), %s1841_s17, 32, %s1847_s19, %s1849_s24   ;;  %v431_v62 = vmul.f32 %v1801_v29, %v1801_v29  ;;  %v596_v63 = vmul.f32 1.442695, %v588_v53  ;;  %v515_v2 = vmul.f32 %v1803_v30, %v1803_v30  ;;  %v1084_v4 = vpop.eup %1083  ;;  %v599_v8 = vmul.f32 %v1813_v43, %v1813_v43 }
  0xdb   : > { %v607_v13 = vmul.f32 %v1827_v58, %v1827_v58  ;;  %s345_s17 = scalar_lea.vmem [#allocation13], %s1646_s14  ;;  %s1910_s20 = scalar_lea.hbm %s1965_s6, %s1738_s15 }
  0xdc   : > { %1085 = vpow2.f32 %v596_v63  ;;  %v432_v1 = vadd.f32 %v1082_v11, %v431_v62  ;;  %s685_s19 = sshll.u32 %s345_s17, 4  ;;  %s629_s10 = scalar_lea.sflag [#allocation14], %s1534_s11  ;;  %s1904_s19 = int_to_ptr.vmem [resolvable:$true] %s685_s19 }
  0xdd   : > { %s1229_s16 = scalar_lea.vmem %s1904_s19, 32  ;;  %s1337_s14 = smov [#allocation13]  }
  0xde   : > { %v514_v5 = vadd.f32 %v1084_v4, %v432_v1  ;;  %p1230_p12 = scmp.ne.s32.totalorder %s1904_s19, %s1229_s16  ;;  %s1233_s0 = sshll.u32 %s1337_s14, 4  ;;  %s1234_s0 = int_to_ptr.vmem [resolvable:$false] %s1233_s0 }
  0xdf   : > { %s1235_s22 = scalar_lea.vmem %s1234_s0, 64  ;;  %p1236_p13 = scmp.lt.s32.totalorder %s1904_s19, %s1234_s0 }
  0xe0   : > { %v516_v6 = vadd.f32 %v515_v2, %v514_v5  ;;  %p1231_p0 = pnand %p1230_p12, %p2003_p10  ;;  %p1237_p4 = scmp.lt.s32.totalorder %s1235_s22, %s1229_s16 }
  0xe2   : > { %p1232_p5 = pneg %p1231_p0  ;;  %p1238_p11 = por %p1237_p4, %p1236_p13 }
  0xe4   : > { %p1239_p3 = pnand %p1238_p11, %p1232_p5 }
  0xe6   : > { %v1086_v9 = vpop.eup %1085 }
  0xe7   : > { %v598_v10 = vadd.f32 %v1086_v9, %v516_v6 }
  0xe9   : > { %v600_v12 = vadd.f32 %v599_v8, %v598_v10 }
  0xeb   : > { %v606_v14 = vmul.f32 0.33333334, %v600_v12 }
  0xed   : > { %v608_v15 = vsub.f32 %v606_v14, %v607_v13 }
  0xef   : > { %612 = vst [vmem:[%s345_s17] sm:$0x3] %v608_v15 }
  0xf0   : > { %1242 = shalt.err (!%p1239_p3)
}
  0xf1   : > { %s1243_s11 = scalar_lea.hbm %s1910_s20, 32  ;;  %s1247_s8 = scalar_lea.hbm %s1965_s6, 64 }
  0xf2   : > { %p1244_p7 = scmp.ne.s32.totalorder %s1910_s20, %s1243_s11  ;;  %p1248_p6 = scmp.lt.u32.totalorder %s1910_s20, %s1965_s6 }
  0xf3   : > { %p1249_p1 = scmp.lt.u32.totalorder %s1247_s8, %s1243_s11  ;;  %p1251_p12 = scmp.lt.u32.totalorder %s1243_s11, %s1910_s20 }
  0xf4   : > { %p1245_p9 = pnand %p1244_p7, %p2003_p10 }
  0xf5   : > { %p1250_p8 = por %p1249_p1, %p1248_p6 }
  0xf6   : > { %p1246_p2 = pneg %p1245_p9 }
  0xf7   : > { %p1252_p0 = por %p1251_p12, %p1250_p8 }
  0xf9   : > { %p1253_p5 = pnand %p1252_p0, %p1246_p2 }
  0xfb   : > { %1256 = shalt.err (!%p1253_p5)
}
  0xfc   : > { %988 = dma.vmem_to_hbm [thread:$0]  (%p2003_p10), %s1904_s19, 32, %s1910_s20, %s629_s10  }
  0xfd PF: > { %s2004_s28 = sld [smem:[#allocation25_spill]]  ;;  %s2005_s12 = sld [smem:[#allocation24_spill]] }
  0xfe   : > { %s697_s27 = sand.u32 1, %s1307_s21  }
  0xff   : > { %s698_s9 = scalar_lea.sflag [#allocation4], %s697_s27 }
 0x103   : > { %p2006_p13 = scmp.ne.s32.totalorder %s2004_s28, 0  ;;  %p2007_p4 = scmp.ge.s32.totalorder %s2005_s12, 2 }
 0x105   : > { %p1005_p11 = pnand %p2007_p4, %p2006_p13 }
 0x107   : > { %1294 = dma.done.wait (!%p1005_p11), %s698_s9, 32  }
 0x108   : > { %1296 = vsyncadd (!%p1005_p11), %s698_s9, 4294967264  ;;  %s2008_s18 = sadd.s32 4294967294, %s2005_s12  }
 0x109   : > { %s706_s13 = sand.u32 1, %s2008_s18  }
 0x10a   : > { %s707_s29 = scalar_lea.sflag [#allocation11], %s706_s13 }
 0x10b   : > { %1298 = dma.done.wait (!%p1005_p11), %s707_s29, 64  }
 0x10c   : > { %1300 = vsyncadd (!%p1005_p11), %s707_s29, 4294967232  ;;  %s725_s7 = scalar_lea.sflag [#allocation14], %s697_s27 }
 0x10d   : > { %1302 = dma.done.wait (!%p1005_p11), %s725_s7, 32  }
 0x10e   : > { %1304 = vsyncadd (!%p1005_p11), %s725_s7, 4294967264  ;;  %s31_s26 = sadd.s32 1, %s2005_s12   ;;  %s2009_s21 = sld [smem:[#allocation21_spill]] }
 0x10f   : > { %p28_p10 = scmp.ge.s32.totalorder %s31_s26, 4   ;;  %s2010_s22 = sld [smem:[#allocation22_spill]] }
 0x110   : > { %s2011_s23 = sld [smem:[#allocation27_spill]]  ;;  %s2012_s24 = sld [smem:[#allocation23_spill]] }
 0x111   : > { %s2013_s25 = sld [smem:[#allocation26_spill]]  ;;  %30 = sbr.rel (!%p28_p10) target bundleno = 16 (0x10), region = 139 }
 0x118   :  { %730 = vsyncpa [#allocation3], 1 }
 0x119   :  { %732 = vsyncpa [#allocation3 + $0x1], 1 }
 0x11a   :  { %733 = vsyncpa [#allocation4], 1 }
 0x11b   :  { %735 = vsyncpa [#allocation4 + $0x1], 1 }
 0x11c   :  { %736 = vsyncpa [#allocation11], 1 }
 0x11d   :  { %738 = vsyncpa [#allocation11 + $0x1], 1 }
 0x11e   :  { %739 = vsyncpa [#allocation14], 1 }
 0x11f   :  { %741 = vsyncpa [#allocation14 + $0x1], 1 }
 0x120   :  { %742 = vsyncpa [#allocation5], 1 }
 0x121   :  { %744 = vsyncpa [#allocation5 + $0x1], 1 }
 0x122   :  { %745 = vsyncpa [#allocation6], 1 }
 0x123   :  { %747 = vsyncpa [#allocation6 + $0x1], 1 }

</bundles_post_ra>
